<compile_context>
chip_gen: v5e
topology: v5e:2x2
jax: 0.10.0
libtpu: 0.0.40
codegen_flags: <defaults>
</compile_context>

<pallas_src>
import functools
import math

import jax
import jax.numpy as jnp
from jax.experimental import pallas as pl
from jax.experimental.pallas import tpu as pltpu

LANE = 128


def _pad_to(n, m):
    return ((n + m - 1) // m) * m


def _row_tile(n):
    # Largest "nice" row tile that divides N; multiples of 8 for sublane
    # alignment, capped at 512 so double-buffered adj tiles fit v7x VMEM.
    for tm in (512, 256, 128, 64, 32, 16, 8):
        if n % tm == 0:
            return tm
    return n  # block equals full dim -> still a legal BlockSpec


# --------------------------------------------------------------------------
# Kernel 1: support = x_tile @ W          (bf16 MXU inputs, f32 accumulation)
# --------------------------------------------------------------------------
def support_kernel(x_ref, w_ref, o_ref):
    o_ref[...] = jnp.dot(
        x_ref[...], w_ref[...], preferred_element_type=jnp.float32
    ).astype(o_ref.dtype)


# --------------------------------------------------------------------------
# Kernel 2: out_tile = act(adj_tile @ support + b)
#   apply_relu=True  -> ReLU, bf16 output (feeds the next layer's MXU pass)
#   apply_relu=False -> masked log_softmax over the first n_valid class lanes,
#                       f32 output
# --------------------------------------------------------------------------
def propagate_kernel(adj_ref, sup_ref, b_ref, o_ref, *, apply_relu, n_valid):
    h = jnp.dot(adj_ref[...], sup_ref[...], preferred_element_type=jnp.float32)
    h = h + b_ref[...]  # bias kept in f32, added on the f32 accumulator

    if apply_relu:
        o_ref[...] = jnp.maximum(h, 0.0).astype(o_ref.dtype)
    else:
        # Masked log_softmax: padded lanes must not contribute to max / sum.
        lane = jax.lax.broadcasted_iota(jnp.int32, h.shape, dimension=1)
        valid = lane < n_valid
        hm = jnp.where(valid, h, -jnp.inf)
        m = jnp.max(hm, axis=1, keepdims=True)
        z = h - m
        ez = jnp.where(valid, jnp.exp(z), 0.0)
        lse = jnp.log(jnp.sum(ez, axis=1, keepdims=True))
        o_ref[...] = (z - lse).astype(o_ref.dtype)


# --------------------------------------------------------------------------
# Wrappers
# --------------------------------------------------------------------------
_PARAMS = pltpu.CompilerParams(dimension_semantics=("parallel",))


def _support(x_bf16, w_bf16, tm):
    n, f = x_bf16.shape
    h = w_bf16.shape[1]
    return pl.pallas_call(
        support_kernel,
        out_shape=jax.ShapeDtypeStruct((n, h), jnp.bfloat16),
        grid=(n // tm,),
        in_specs=[
            pl.BlockSpec((tm, f), lambda i: (i, 0)),   # x row tile
            pl.BlockSpec((f, h), lambda i: (0, 0)),    # W resident
        ],
        out_specs=pl.BlockSpec((tm, h), lambda i: (i, 0)),
        compiler_params=_PARAMS,
    )(x_bf16, w_bf16)


def _propagate(adj_bf16, sup_bf16, b_f32, tm, *, apply_relu, n_valid, out_dtype):
    n = adj_bf16.shape[0]
    h = sup_bf16.shape[1]
    kern = functools.partial(propagate_kernel, apply_relu=apply_relu, n_valid=n_valid)
    return pl.pallas_call(
        kern,
        out_shape=jax.ShapeDtypeStruct((n, h), out_dtype),
        grid=(n // tm,),
        in_specs=[
            pl.BlockSpec((tm, n), lambda i: (i, 0)),   # adj row tile, full cols
            pl.BlockSpec((n, h), lambda i: (0, 0)),    # support fully resident
            pl.BlockSpec((1, h), lambda i: (0, 0)),    # bias resident
        ],
        out_specs=pl.BlockSpec((tm, h), lambda i: (i, 0)),
        compiler_params=_PARAMS,
    )(adj_bf16, sup_bf16, b_f32)


def gcn_forward(x, adj, w1, b1, w2, b2):
    n, n_feat = x.shape
    n_hid = w1.shape[1]
    n_class = w2.shape[1]

    f_pad = _pad_to(n_feat, LANE)
    h_pad = _pad_to(n_hid, LANE)
    c_pad = _pad_to(n_class, LANE)

    # Lane-pad to 128 multiples; cast MXU operands to bf16, biases stay f32.
    x_p = jnp.zeros((n, f_pad), jnp.bfloat16).at[:, :n_feat].set(x.astype(jnp.bfloat16))
    w1_p = jnp.zeros((f_pad, h_pad), jnp.bfloat16).at[:n_feat, :n_hid].set(
        w1.astype(jnp.bfloat16))
    b1_p = jnp.zeros((1, h_pad), jnp.float32).at[:, :n_hid].set(
        b1.reshape(1, n_hid).astype(jnp.float32))
    w2_p = jnp.zeros((h_pad, c_pad), jnp.bfloat16).at[:n_hid, :n_class].set(
        w2.astype(jnp.bfloat16))
    b2_p = jnp.zeros((1, c_pad), jnp.float32).at[:, :n_class].set(
        b2.reshape(1, n_class).astype(jnp.float32))
    adj_b = adj.astype(jnp.bfloat16)

    tm = _row_tile(n)

    # ---- layer 1: GraphConvolution(n_feat -> n_hid) + ReLU ----
    sup1 = _support(x_p, w1_p, tm)                                  # (n, h_pad) bf16
    h1 = _propagate(adj_b, sup1, b1_p, tm,
                    apply_relu=True, n_valid=n_hid, out_dtype=jnp.bfloat16)

    # TODO(synk): F.dropout is identity in eval mode (training=False); train-time
    # stochastic masking would use pltpu.prng_seed / pltpu.stateful_bernoulli.

    # ---- layer 2: GraphConvolution(n_hid -> n_class) + log_softmax(dim=1) ----
    sup2 = _support(h1, w2_p, tm)                                   # (n, c_pad) bf16
    out_p = _propagate(adj_b, sup2, b2_p, tm,
                       apply_relu=False, n_valid=n_class, out_dtype=jnp.float32)

    return out_p[:, :n_class]


def init_gc_params(key, in_features, out_features):
    # Matches GraphConvolution_subsubmodule.reset_parameters:
    #   stdv = 1/sqrt(out_features); uniform(-stdv, stdv) for weight and bias.
    stdv = 1.0 / math.sqrt(out_features)
    kw, kb = jax.random.split(key)
    w = jax.random.uniform(kw, (in_features, out_features),
                           minval=-stdv, maxval=stdv, dtype=jnp.float32)
    b = jax.random.uniform(kb, (out_features,),
                           minval=-stdv, maxval=stdv, dtype=jnp.float32)
    return w, b


if __name__ == "__main__":
    # Small shapes: N=32 nodes, n_feat=16, n_hid=32, n_class=8
    N, n_feat, n_hid, n_class = 32, 16, 32, 8

    key = jax.random.PRNGKey(0)
    kx, kadj, k1, k2 = jax.random.split(key, 4)

    x = jax.random.normal(kx, (N, n_feat), dtype=jnp.float32)

    # Symmetric row-normalized adjacency (typical GCN preprocessing), dense.
    a = jax.random.uniform(kadj, (N, N), dtype=jnp.float32)
    a = (a > 0.7).astype(jnp.float32)
    a = a + a.T + jnp.eye(N, dtype=jnp.float32)
    a = jnp.clip(a, 0.0, 1.0)
    deg = jnp.sum(a, axis=1, keepdims=True)
    adj = a / deg

    w1, b1 = init_gc_params(k1, n_feat, n_hid)
    w2, b2 = init_gc_params(k2, n_hid, n_class)

    out = gcn_forward(x, adj, w1, b1, w2, b2)
    jax.block_until_ready(out)

    assert out.shape == (N, n_class)

    # Sanity 1: log_softmax rows sum (in prob space) to ~1.
    row_sums = jnp.sum(jnp.exp(out), axis=1)
    assert bool(jnp.all(jnp.abs(row_sums - 1.0) < 1e-4))

    # Sanity 2: close to a pure-JAX f32 reference (bf16 matmuls -> loose tol).
    def ref(x, adj, w1, b1, w2, b2):
        h1 = jnp.maximum(adj @ (x @ w1) + b1, 0.0)
        h2 = adj @ (h1 @ w2) + b2
        return jax.nn.log_softmax(h2, axis=1)

    ref_out = ref(x, adj, w1, b1, w2, b2)
    assert bool(jnp.max(jnp.abs(out - ref_out)) < 5e-2)

    print("KERNEL_OK")
</pallas_src>

<mosaic_0001>
module attributes {stable_mosaic.version = 11 : i64} {
  func.func @support_kernel(%arg0: i32, %arg1: memref<32x128xbf16, #tpu.memory_space<vmem>>, %arg2: memref<128x128xbf16, #tpu.memory_space<vmem>>, %arg3: memref<32x128xbf16, #tpu.memory_space<vmem>>) attributes {dimension_semantics = [#tpu.dimension_semantics<parallel>], iteration_bounds = array<i64: 1>, scalar_prefetch = 0 : i64, scratch_operands = 0 : i64, tpu.core_type = #tpu.core_type<tc>, window_params = [{transform_indices = @transform_0, window_bounds = array<i64: 32, 128>}, {pipeline_mode = #tpu.pipeline_mode<synchronous>, transform_indices = @transform_1, window_bounds = array<i64: 128, 128>}, {transform_indices = @transform_2, window_bounds = array<i64: 32, 128>}]} {
    %c0 = arith.constant 0 : index
    %c0_0 = arith.constant 0 : index
    %0 = vector.load %arg1[%c0, %c0_0] : memref<32x128xbf16, #tpu.memory_space<vmem>>, vector<32x128xbf16>
    %c0_1 = arith.constant 0 : index
    %c0_2 = arith.constant 0 : index
    %1 = vector.load %arg2[%c0_1, %c0_2] : memref<128x128xbf16, #tpu.memory_space<vmem>>, vector<128x128xbf16>
    %cst = arith.constant dense<0.000000e+00> : vector<32x128xf32>
    %2 = tpu.matmul %0, %1, %cst {dimension_numbers = #tpu.dot_dimension_numbers<[1], [0], [0], [1], [0, 0, 1, 1], [], []>} : vector<32x128xbf16>, vector<128x128xbf16>, vector<32x128xf32> -> vector<32x128xf32>
    %3 = arith.truncf %2 : vector<32x128xf32> to vector<32x128xbf16>
    %c0_3 = arith.constant 0 : index
    %c0_4 = arith.constant 0 : index
    %4 = vector.load %arg3[%c0_3, %c0_4] : memref<32x128xbf16, #tpu.memory_space<vmem>>, vector<32x128xbf16>
    tpu.vector_store %arg3[%c0_3, %c0_4], %3 {strides = array<i32>} : memref<32x128xbf16, #tpu.memory_space<vmem>>, vector<32x128xbf16>,
    return
  }
  func.func @transform_0(%arg0: i32) -> (i32, i32) {
    %c0_i32 = arith.constant 0 : i32
    %c0_i32_0 = arith.constant 0 : i32
    return %arg0, %c0_i32 : i32, i32
  }
  func.func @transform_1(%arg0: i32) -> (i32, i32) {
    %c0_i32 = arith.constant 0 : i32
    %c0_i32_0 = arith.constant 0 : i32
    %c0_i32_1 = arith.constant 0 : i32
    return %c0_i32, %c0_i32_0 : i32, i32
  }
  func.func @transform_2(%arg0: i32) -> (i32, i32) {
    %c0_i32 = arith.constant 0 : i32
    %c0_i32_0 = arith.constant 0 : i32
    return %arg0, %c0_i32 : i32, i32
  }
}

</mosaic_0001>

<bundles_post_ra>
// kernel: tpu_custom_call.1
= control target key start
LH: loop header
LB: loop body
LE: loop exit
PB: predicated region body
PF: predicated region fallthrough
CT: control target
= control target key end

     0   :  { %7 = vsyncpa [#allocation3], 0  ;;  %s361_s0 = inlined_call_operand.hbm [shape: bf16[32,128], index: 0, kind: input, shape index: {}]   ;;  %s362_s1 = inlined_call_operand.hbm [shape: bf16[128,128], index: 1, kind: input, shape index: {}]   ;;  %s363_s2 = inlined_call_operand.hbm [shape: bf16[32,128], index: 2, kind: output, shape index: {}]  }
   0x1   :  { %8 = vsyncpa [#allocation6], 0 }
   0x2   :  { %9 = vsyncpa [#allocation4], 0  ;;  %s14_s11 = sshll.u32 %s361_s0, 4  ;;  %s323_s12 = smov [#allocation2]   ;;  %s15_s11 = int_to_ptr.hbm [resolvable:$true] %s14_s11 }
   0x3   :  { %s16_s13 = sshll.u32 %s323_s12, 4  ;;  %s27_s16 = sshll.u32 %s362_s1, 4  ;;  %s17_s13 = int_to_ptr.vmem [resolvable:$true] %s16_s13  ;;  %s28_s16 = int_to_ptr.hbm [resolvable:$true] %s27_s16 }
   0x4   :  { %s324_s17 = smov 64   ;;  %s325_s18 = smov 4  }
   0x5   :  { %22 = dma.hbm_to_vmem [thread:$0]  %s15_s11, 256, %s17_s13, [#allocation3], %s324_s17, %s324_s17, %s325_s18  }
   0x6   :  { %s326_s19 = smov [#allocation5]  }
   0x7   :  { %s29_s20 = sshll.u32 %s326_s19, 4  ;;  %s30_s20 = int_to_ptr.vmem [resolvable:$true] %s29_s20 }
   0x8   :  { %35 = dma.hbm_to_vmem [thread:$0]  %s28_s16, 1024, %s30_s20, [#allocation6], %s324_s17, %s324_s17, %s325_s18  }
   0x9   :  { %317 = dma.done.wait [#allocation3], 256  }
   0xa   :  { %318 = vsyncadd [#allocation3], 4294967040 }
   0xb   :  { %319 = dma.done.wait [#allocation6], 1024  }
   0xc   :  { %320 = vsyncadd [#allocation6], 4294966272  ;;  %v220_v0 = vld [vmem:[#allocation5 + $0x38] sm:$0xff]  ;;  %v219_v1 = vld [vmem:[#allocation5 + $0x30] sm:$0xff]  ;;  %s327_s0 = smov [#allocation7]   ;;  %s157_s23 = sshll.u32 %s363_s2, 4  ;;  %s158_s23 = int_to_ptr.hbm [resolvable:$true] %s157_s23 }
   0xd   :  { %124 = vmatpush.bf16.msra.mxu0 %v220_v0  ;;  %232 = vmatpush.bf16.msra.mxu1 %v220_v0  ;;  %v218_v2 = vld [vmem:[#allocation5 + $0x28] sm:$0xff]  ;;  %v217_v3 = vld [vmem:[#allocation5 + $0x20] sm:$0xff]  ;;  %v216_v4 = vld [vmem:[#allocation5 + $0x18] sm:$0xff]  ;;  %s155_s1 = sshll.u32 %s327_s0, 4  ;;  %s156_s1 = int_to_ptr.vmem [resolvable:$true] %s155_s1 }
   0xe   :  { %v215_v5 = vld [vmem:[#allocation5 + $0x10] sm:$0xff]  ;;  %v214_v6 = vld [vmem:[#allocation5 + $0x8] sm:$0xff]  ;;  %v213_v7 = vld [vmem:[#allocation5] sm:$0xff] }
   0xf   :  { %v211_v8 = vld [vmem:[#allocation2] sm:$0xff]  ;;  %v212_v9 = vld [vmem:[#allocation2 + $0x8] sm:$0xff] }
  0x11   :  { %125 = vmatpush.bf16.msra.mxu0 %v219_v1  ;;  %233 = vmatpush.bf16.msra.mxu1 %v219_v1 }
  0x15   :  { %126 = vmatpush.bf16.msra.mxu0 %v218_v2  ;;  %234 = vmatpush.bf16.msra.mxu1 %v218_v2 }
  0x19   :  { %127 = vmatpush.bf16.msra.mxu0 %v217_v3  ;;  %235 = vmatpush.bf16.msra.mxu1 %v217_v3 }
  0x1d   :  { %128 = vmatpush.bf16.msra.mxu0 %v216_v4  ;;  %236 = vmatpush.bf16.msra.mxu1 %v216_v4 }
  0x21   :  { %129 = vmatpush.bf16.msra.mxu0 %v215_v5  ;;  %237 = vmatpush.bf16.msra.mxu1 %v215_v5 }
  0x25   :  { %130 = vmatpush.bf16.msra.mxu0 %v214_v6  ;;  %238 = vmatpush.bf16.msra.mxu1 %v214_v6 }
  0x29   :  { %131 = vmatpush.bf16.msra.mxu0 %v213_v7  ;;  %239 = vmatpush.bf16.msra.mxu1 %v213_v7 }
  0x2c   :  { %132 = vmatmul.bf16.vlgmr.msra.gmra.mxu0 %v211_v8  ;;  %137 = vmatmul.bf16.vlgmr.msra.gmra.mxu1 %v212_v9 }
  0xa9   :  { %v133_v10 = vpop.f32.mrf.mxu0  ;;  %v138_v11 = vpop.f32.mrf.mxu1 }
  0xb1   :  { %v135_v12 = vpop.f32.mrf.mxu0  ;;  %v140_v13 = vpop.f32.mrf.mxu1 }
  0xb2   :  { %v224_v14 = vpack.c.bf16 %v135_v12, %v133_v10  ;;  %v229_v15 = vpack.c.bf16 %v140_v13, %v138_v11 }
  0xb4   :  { %225 = vst [vmem:[#allocation7] sm:$0xff] %v224_v14  }
  0xb5   :  { %231 = vst [vmem:[#allocation7 + $0x8] sm:$0xff] %v229_v15  }
  0xb6   :  { %163 = dma.vmem_to_hbm [thread:$0]  %s156_s1, 256, %s158_s23, [#allocation4], %s324_s17, %s324_s17, %s325_s18  }
  0xb7   :  { %321 = dma.done.wait [#allocation4], 256  }
  0xb8   :  { %322 = vsyncadd [#allocation4], 4294967040 }
  0xb9   :  { %168 = vsyncpa [#allocation3], 1 }
  0xba   :  { %169 = vsyncpa [#allocation6], 1 }
  0xbb   :  { %170 = vsyncpa [#allocation4], 1 }

</bundles_post_ra>
